<compile_context>
chip_gen: v7x
topology: tpu7x:2x2x1
jax: 0.10.0
libtpu: 0.0.40
codegen_flags: <defaults>
</compile_context>

<pallas_src>
import functools

import jax
import jax.numpy as jnp
from jax.experimental import pallas as pl
from jax.experimental.pallas import tpu as pltpu


def _center_loss_kernel(x_ref,         # VMEM (TB, D)   pipelined batch tile
                        labels_ref,    # VMEM (TB, 1)   int32 labels (-1 = pad)
                        centers_ref,   # VMEM (C, D)    resident across the grid
                        out_ref,       # SMEM (1, 1)    scalar loss
                        acc_ref,       # VMEM (TB, 1)   f32 running partial sums
                        *, batch_size, num_classes):
    step = pl.program_id(0)

    @pl.when(step == 0)
    def _init():
        acc_ref[...] = jnp.zeros_like(acc_ref)

    labels = labels_ref[...]                                      # (TB, 1) int32
    tile_b = labels.shape[0]

    # One-hot row selection of this tile's centers on the (idle) MXU:
    # exact gather of centers[labels], no per-row DMAs, no dynamic gather.
    class_ids = jax.lax.broadcasted_iota(jnp.int32, (tile_b, num_classes), 1)
    onehot = (labels == class_ids).astype(centers_ref.dtype)      # (TB, C)
    gathered = jnp.dot(onehot, centers_ref[...],
                       preferred_element_type=jnp.float32)        # (TB, D) f32

    # Cast to f32 BEFORE the subtraction (precision for low-precision inputs).
    x = x_ref[...].astype(jnp.float32)
    diff = x - gathered
    dist = jnp.sum(diff * diff, axis=1, keepdims=True)            # (TB, 1)
    dist = jnp.clip(dist, 1e-12, 1e12)

    # Padded rows were given label -1 -> contribute exactly 0 to the sum.
    valid = labels >= 0
    acc_ref[...] += jnp.where(valid, dist, 0.0)

    @pl.when(step == pl.num_programs(0) - 1)
    def _finalize():
        out_ref[0, 0] = jnp.sum(acc_ref[...]) / jnp.float32(batch_size)


def _round_up(a, m):
    return ((a + m - 1) // m) * m


def center_loss(x, centers, labels, *, tile_b=256):
    """x: (B, D) float, centers: (C, D) float, labels: (B,) int -> scalar loss."""
    B, D = x.shape
    C, Dc = centers.shape
    assert D == Dc, (D, Dc)
    labels = labels.astype(jnp.int32)

    # Pick an 8-aligned batch tile: at most `tile_b`, balanced across tiles so
    # padding waste stays small; pad B up to a multiple of it (labels -> -1).
    tile_b = max(8, min(_round_up(tile_b, 8), _round_up(B, 8)))
    num_tiles = pl.cdiv(B, tile_b)
    tile_b = _round_up(pl.cdiv(B, num_tiles), 8)
    b_pad = tile_b * num_tiles

    if b_pad != B:
        x = jnp.pad(x, ((0, b_pad - B), (0, 0)))
        labels = jnp.pad(labels, (0, b_pad - B), constant_values=-1)
    labels2d = labels.reshape(b_pad, 1)

    # VMEM budget: double-buffered x/labels tiles + resident centers + acc.
    x_bytes = jnp.dtype(x.dtype).itemsize
    c_bytes = jnp.dtype(centers.dtype).itemsize
    vmem_bytes = (2 * (tile_b * D * x_bytes + tile_b * 4)
                  + 2 * C * D * c_bytes
                  + tile_b * 4
                  + (4 << 20))                      # headroom for internals
    vmem_limit = int(min(max(vmem_bytes, 32 << 20), 96 << 20))
    # TODO(synk): if C*D*c_bytes does not fit VMEM (v7x has only 64 MiB), switch
    # centers to memory_space=pl.ANY + double-buffered per-row DMA gather.

    kernel = functools.partial(_center_loss_kernel,
                               batch_size=B, num_classes=C)

    out = pl.pallas_call(
        kernel,
        out_shape=jax.ShapeDtypeStruct((1, 1), jnp.float32),
        grid_spec=pltpu.PrefetchScalarGridSpec(
            num_scalar_prefetch=0,
            grid=(num_tiles,),
            in_specs=[
                pl.BlockSpec((tile_b, D), lambda i: (i, 0)),   # x tile
                pl.BlockSpec((tile_b, 1), lambda i: (i, 0)),   # labels tile
                pl.BlockSpec((C, D), lambda i: (0, 0)),        # centers, resident
            ],
            out_specs=pl.BlockSpec(memory_space=pltpu.MemorySpace.SMEM),
            scratch_shapes=[
                pltpu.VMEM((tile_b, 1), jnp.float32),          # vector accumulator
            ],
        ),
        compiler_params=pltpu.CompilerParams(
            # The batch-tile axis carries the VMEM accumulator -> reduction axis.
            dimension_semantics=("arbitrary",),
            vmem_limit_bytes=vmem_limit,
        ),
    )(x, labels2d, centers)
    return out[0, 0]


def center_loss_ref(x, centers, labels):
    """Plain-JAX reference mirroring the PyTorch distmat forward path."""
    B = x.shape[0]
    C = centers.shape[0]
    distmat = (jnp.sum(x ** 2, axis=1, keepdims=True)
               + jnp.sum(centers ** 2, axis=1, keepdims=True).T
               - 2.0 * x @ centers.T)
    mask = labels[:, None] == jnp.arange(C)[None, :]
    dist = jnp.where(mask, jnp.clip(distmat, 1e-12, 1e12), 0.0)
    return jnp.sum(dist) / B


if __name__ == "__main__":
    key = jax.random.PRNGKey(0)
    k_x, k_c, k_l = jax.random.split(key, 3)

    batch_size = 8
    num_classes = 16
    feat_dim = 32

    # Deterministic init (stands in for nn.Parameter(torch.randn(...))).
    centers = jax.random.normal(k_c, (num_classes, feat_dim), dtype=jnp.float32)
    x = jax.random.normal(k_x, (batch_size, feat_dim), dtype=jnp.float32)
    labels = jax.random.randint(k_l, (batch_size,), 0, num_classes, dtype=jnp.int32)

    loss = jax.block_until_ready(center_loss(x, centers, labels))
    ref = jax.block_until_ready(center_loss_ref(x, centers, labels))

    assert jnp.allclose(loss, ref, rtol=1e-5, atol=1e-5), (loss, ref)
    print("KERNEL_OK")
</pallas_src>

<mosaic_0001>
module attributes {stable_mosaic.version = 11 : i64} {
  func.func @_center_loss_kernel(%arg0: i32, %arg1: memref<8x32xf32, #tpu.memory_space<vmem>>, %arg2: memref<8x1xi32, #tpu.memory_space<vmem>>, %arg3: memref<16x32xf32, #tpu.memory_space<vmem>>, %arg4: memref<1x1xf32, #tpu.memory_space<smem>>, %arg5: memref<8x1xf32, #tpu.memory_space<vmem>>) attributes {dimension_semantics = [#tpu.dimension_semantics<arbitrary>], iteration_bounds = array<i64: 1>, scalar_prefetch = 0 : i64, scratch_operands = 1 : i64, tpu.core_type = #tpu.core_type<tc>, window_params = [{transform_indices = @transform_0, window_bounds = array<i64: 8, 32>}, {transform_indices = @transform_1, window_bounds = array<i64: 8, 1>}, {pipeline_mode = #tpu.pipeline_mode<synchronous>, transform_indices = @transform_2, window_bounds = array<i64: 16, 32>}, {transform_indices = @transform_3, window_bounds = array<i64: 1, 1>}]} {
    %c0_i32 = arith.constant 0 : i32
    %0 = arith.cmpi eq, %arg0, %c0_i32 : i32
    %1 = arith.extui %0 : i1 to i32
    %c0_i32_0 = arith.constant 0 : i32
    %2 = arith.cmpi ne, %1, %c0_i32_0 : i32
    scf.if %2 {
      %cst_17 = arith.constant 0.000000e+00 : f32
      %30 = vector.broadcast %cst_17 : f32 to vector<8x1xf32>
      %c0_18 = arith.constant 0 : index
      %c0_19 = arith.constant 0 : index
      %31 = vector.load %arg5[%c0_18, %c0_19] : memref<8x1xf32, #tpu.memory_space<vmem>>, vector<8x1xf32>
      tpu.vector_store %arg5[%c0_18, %c0_19], %30 {strides = array<i32>} : memref<8x1xf32, #tpu.memory_space<vmem>>, vector<8x1xf32>,
    } else {
    }
    %c0 = arith.constant 0 : index
    %c0_1 = arith.constant 0 : index
    %3 = vector.load %arg2[%c0, %c0_1] : memref<8x1xi32, #tpu.memory_space<vmem>>, vector<8x1xi32>
    %4 = tpu.iota {dimensions = array<i32: 1>} : vector<8x16xi32>
    %5 = vector.broadcast %3 : vector<8x1xi32> to vector<8x16xi32>
    %6 = arith.cmpi eq, %5, %4 : vector<8x16xi32>
    %7 = arith.extui %6 : vector<8x16xi1> to vector<8x16xi32>
    %8 = arith.sitofp %7 : vector<8x16xi32> to vector<8x16xf32>
    %c0_2 = arith.constant 0 : index
    %c0_3 = arith.constant 0 : index
    %9 = vector.load %arg3[%c0_2, %c0_3] : memref<16x32xf32, #tpu.memory_space<vmem>>, vector<16x32xf32>
    %cst = arith.constant dense<0.000000e+00> : vector<8x32xf32>
    %10 = tpu.matmul %8, %9, %cst {dimension_numbers = #tpu.dot_dimension_numbers<[1], [0], [0], [1], [0, 0, 1, 1], [], []>} : vector<8x16xf32>, vector<16x32xf32>, vector<8x32xf32> -> vector<8x32xf32>
    %c0_4 = arith.constant 0 : index
    %c0_5 = arith.constant 0 : index
    %11 = vector.load %arg1[%c0_4, %c0_5] : memref<8x32xf32, #tpu.memory_space<vmem>>, vector<8x32xf32>
    %12 = arith.subf %11, %10 : vector<8x32xf32>
    %13 = arith.mulf %12, %12 : vector<8x32xf32>
    %cst_6 = arith.constant dense<0.000000e+00> : vector<8xf32>
    %14 = vector.multi_reduction <add>, %13, %cst_6 [1] : vector<8x32xf32> to vector<8xf32>
    %15 = vector.shape_cast %14 : vector<8xf32> to vector<8x1xf32>
    %cst_7 = arith.constant 9.99999996E-13 : f32
    %cst_8 = arith.constant 9.99999995E+11 : f32
    %16 = vector.broadcast %cst_7 : f32 to vector<8x1xf32>
    %17 = arith.maximumf %16, %15 : vector<8x1xf32>
    %18 = vector.broadcast %cst_8 : f32 to vector<8x1xf32>
    %19 = arith.minimumf %18, %17 : vector<8x1xf32>
    %c0_i32_9 = arith.constant 0 : i32
    %20 = vector.broadcast %c0_i32_9 : i32 to vector<8x1xi32>
    %21 = arith.cmpi sge, %3, %20 : vector<8x1xi32>
    %c0_10 = arith.constant 0 : index
    %c0_11 = arith.constant 0 : index
    %22 = vector.load %arg5[%c0_10, %c0_11] : memref<8x1xf32, #tpu.memory_space<vmem>>, vector<8x1xf32>
    %cst_12 = arith.constant 0.000000e+00 : f32
    %23 = vector.broadcast %cst_12 : f32 to vector<8x1xf32>
    %24 = arith.select %21, %19, %23 : vector<8x1xi1>, vector<8x1xf32>
    %25 = arith.addf %22, %24 : vector<8x1xf32>
    %c0_13 = arith.constant 0 : index
    %c0_14 = arith.constant 0 : index
    %26 = vector.load %arg5[%c0_13, %c0_14] : memref<8x1xf32, #tpu.memory_space<vmem>>, vector<8x1xf32>
    tpu.vector_store %arg5[%c0_13, %c0_14], %25 {strides = array<i32>} : memref<8x1xf32, #tpu.memory_space<vmem>>, vector<8x1xf32>,
    %c0_i32_15 = arith.constant 0 : i32
    %27 = arith.cmpi eq, %arg0, %c0_i32_15 : i32
    %28 = arith.extui %27 : i1 to i32
    %c0_i32_16 = arith.constant 0 : i32
    %29 = arith.cmpi ne, %28, %c0_i32_16 : i32
    scf.if %29 {
      %c0_17 = arith.constant 0 : index
      %c0_18 = arith.constant 0 : index
      %30 = vector.load %arg5[%c0_17, %c0_18] : memref<8x1xf32, #tpu.memory_space<vmem>>, vector<8x1xf32>
      %31 = vector.shape_cast %30 : vector<8x1xf32> to vector<1x8x1xf32>
      %cst_19 = arith.constant dense<0.000000e+00> : vector<1xf32>
      %32 = vector.multi_reduction <add>, %31, %cst_19 [1, 2] : vector<1x8x1xf32> to vector<1xf32>
      %33 = vector.shape_cast %32 : vector<1xf32> to vector<1x1x1xf32>
      %34 = vector.extract %33[0, 0, 0] : f32 from vector<1x1x1xf32>
      %cst_20 = arith.constant 8.000000e+00 : f32
      %35 = arith.divf %34, %cst_20 : f32
      %c0_21 = arith.constant 0 : index
      %c0_22 = arith.constant 0 : index
      %36 = memref.load %arg4[%c0_21, %c0_22] : memref<1x1xf32, #tpu.memory_space<smem>>
      memref.store %35, %arg4[%c0_21, %c0_22] : memref<1x1xf32, #tpu.memory_space<smem>>
    } else {
    }
    return
  }
  func.func @transform_0(%arg0: i32) -> (i32, i32) {
    %c0_i32 = arith.constant 0 : i32
    %c0_i32_0 = arith.constant 0 : i32
    return %arg0, %c0_i32 : i32, i32
  }
  func.func @transform_1(%arg0: i32) -> (i32, i32) {
    %c0_i32 = arith.constant 0 : i32
    %c0_i32_0 = arith.constant 0 : i32
    return %arg0, %c0_i32 : i32, i32
  }
  func.func @transform_2(%arg0: i32) -> (i32, i32) {
    %c0_i32 = arith.constant 0 : i32
    %c0_i32_0 = arith.constant 0 : i32
    %c0_i32_1 = arith.constant 0 : i32
    return %c0_i32, %c0_i32_0 : i32, i32
  }
  func.func @transform_3(%arg0: i32) -> (i32, i32) {
    %c0_i32 = arith.constant 0 : i32
    %c0_i32_0 = arith.constant 0 : i32
    %c0_i32_1 = arith.constant 0 : i32
    return %c0_i32, %c0_i32_0 : i32, i32
  }
}

</mosaic_0001>

<bundles_post_ra>
// kernel: tpu_custom_call.1
= control target key start
LH: loop header
LB: loop body
LE: loop exit
PB: predicated region body
PF: predicated region fallthrough
CT: control target
= control target key end

     0   :  { %8 = vsyncpa [#allocation4], 0  ;;  %s285_s0 = inlined_call_operand.hbm [shape: f32[8,32], index: 0, kind: input, shape index: {}]   ;;  %s286_s1 = inlined_call_operand.vmem [shape: s32[8,1], index: 1, kind: input, shape index: {}]   ;;  %s287_s2 = inlined_call_operand.vmem [shape: f32[16,32], index: 2, kind: input, shape index: {}]   ;;  %s288_s3 = inlined_call_operand.hbm [shape: f32[1,1], index: 3, kind: output, shape index: {}]  }
   0x1   :  { %9 = vsyncpa [#allocation5], 0  ;;  %s226_s12 = smov [#allocation3]   ;;  %s190_s16 = scalar_lea.hbm %s285_s0, 128 }
   0x2   :  { %s16_s13 = sshll.u32 %s226_s12, 4  ;;  %p191_p0 = scmp.ne.s32.totalorder %s285_s0, %s190_s16  ;;  %s17_s13 = int_to_ptr.vmem [resolvable:$true] %s16_s13 }
   0x3   :  { %p194_p1 = scmp.lt.u32.totalorder %s190_s16, %s285_s0 }
   0x5   :  { %p196_p2 = pnand %p194_p1, %p191_p0 }
   0x7   :  { %199 = shalt.err (!%p196_p2)
}
   0x8   :  { %s200_s21 = scalar_lea.vmem %s17_s13, 128  ;;  %p205_p4 = scmp.lt.s32.totalorder %s17_s13, %s17_s13 }
   0x9   :  { %p201_p3 = scmp.ne.s32.totalorder %s17_s13, %s200_s21  ;;  %p206_p5 = scmp.lt.s32.totalorder %s200_s21, %s200_s21 }
   0xb   :  { %p207_p6 = por %p206_p5, %p205_p4 }
   0xd   :  { %p208_p7 = pnand %p207_p6, %p201_p3 }
   0xf   :  { %211 = shalt.err (!%p208_p7)
}
  0x10   :  { %19 = dma.hbm_to_vmem [thread:$0]  %s285_s0, 128, %s17_s13, [#allocation4]  }
  0x11   :  { %222 = dma.done.wait [#allocation4], 128  }
  0x12   :  { %223 = vsyncadd [#allocation4], 4294967168  ;;  %v227_v0 = vmov 0   ;;  %v228_v1 = vmov 0.0|0.0   ;;  %v33_v2 = vld [vmem:[%s286_s1] sm:$0xff]  ;;  %v43_v4 = vld [vmem:[%s287_s2 + $0x8] sm:$0xff]  ;;  %v34_v7 = vlaneseq }
  0x13   :  { %189 = vset.pattern.permute.xlu0 %v227_v0  ;;  %178 = vmatprep.subr.bf16.mxu0 %v228_v1  ;;  %v42_v3 = vld [vmem:[%s287_s2] sm:$0xff]  ;;  %vm229_vm0 = vmmov 0   ;;  %v230_v6 = vmov 0.0   ;;  %vm44_vm1 = vcmask 130048   ;;  %v118_v11 = vld [vmem:[#allocation3] sm:$0xff]  ;;  %vm121_vm3 = vcmask 261120  }
  0x14   :  { %37 = vperm.xlu0 %189, %v33_v2   ;;  %v179_v5 = vpack.c.bf16 %v43_v4, %v42_v3  ;;  %175 = vmatprep.mubr.msk.f32.mxu0 %vm229_vm0, %v230_v6  ;;  %v35_v8 = vand.u32 127, %v34_v7  ;;  %vm31_vm4 = vcmask 7168   ;;  %vm127_vm5 = vcmp.ge.s32.totalorder %v33_v2, 0  ;;  %s212_s4 = scalar_lea.hbm %s288_s3, 16 }
  0x15   :  { %32 = vst.msk [vmem:[#allocation2] sm:$0xff] %vm31_vm4, %v230_v6  ;;  %p213_p8 = scmp.ne.s32.totalorder %s288_s3, %s212_s4  ;;  %p216_p9 = scmp.lt.u32.totalorder %s212_s4, %s288_s3 }
  0x16   :  { %180 = vmatpush3.bf16.msra.mxu0 %v179_v5 }
  0x17   :  { %p218_p10 = pnand %p216_p9, %p213_p8 }
  0x1c   :  { %v128_v20 = vld [vmem:[#allocation2] sm:$0xff] }
  0x93   :  { %v38_v9 = vpop.permute.xlu0 %37 }
  0x94   :  { %vm39_vm2 = vcmp.eq.s32.totalorder %v38_v9, %v35_v8 }
  0x95   :  { %v166_v10 = vsel %vm39_vm2, 1.0, %v230_v6 }
  0x96   :  { %176 = vmatmul.mubr.msk.f32.vlgmr.msra.gmra.mrb[0].mxu0 %vm44_vm1, %v166_v10 }
 0x169   :  { %v114_v12 = vpop.f32.mrb[0].mxu0 }
 0x16a   :  { %v119_v13 = vsub.f32 %v118_v11, %v114_v12  ;;  %v177_v14 = vpop.f32.mrb[1].mxu0 }
 0x16c   :  { %v120_v15 = vmul.f32 %v119_v13, %v119_v13 }
 0x16e   :  { %v122_v16 = vsel %vm121_vm3, %v120_v15, 0.0 }
 0x16f   :  { %123 = vadd.xlane.f32.xlu0 %v122_v16 }
 0x1fc   :  { %v124_v17 = vpop.xlane.xlu0 %123 }
 0x1fd   :  { %v125_v18 = vmax.f32 %v124_v17, 1e-12 }
 0x1ff   :  { %v126_v19 = vmin.f32 %v125_v18, 1e+12 }
 0x201   :  { %v129_v21 = vsel %vm127_vm5, %v126_v19, 0.0 }
 0x202   :  { %v130_v22 = vadd.f32 %v129_v21, %v128_v20 }
 0x204   :  { %132 = vst.msk [vmem:[#allocation2] sm:$0xff] %vm31_vm4, %v130_v22 }
 0x20b   :  { %v136_v23 = vld [vmem:[#allocation2] sm:$0xff] }
 0x20c   :  { %v137_v24 = vsel %vm31_vm4, %v136_v23, 0.0 }
 0x20d   :  { %138 = vadd.xlane.f32.xlu1 %v137_v24 }
 0x29a   :  { %v139_v25 = vpop.xlane.xlu1 %138 }
 0x29b   :  { %v140_v26 = vrot.slane %v139_v25, 4 }
 0x29d   :  { %v141_v27 = vadd.f32 %v140_v26, %v139_v25 }
 0x29f   :  { %v142_v28 = vrot.slane %v141_v27, 2 }
 0x2a1   :  { %v143_v29 = vadd.f32 %v142_v28, %v141_v27 }
 0x2a3   :  { %v144_v30 = vrot.slane %v143_v29, 1 }
 0x2a5   :  { %v145_v31 = vadd.f32 %v144_v30, %v143_v29 }
 0x2a7   :  { %181 = vpush %v145_v31 }
 0x2d8   :  { %s182_s0 = spop %181 }
 0x2d9   :  { %s149_s1 = smul.f32 0.125, %s182_s0 }
 0x2db   :  { %151 = sst [smem:[#allocation6]] %s149_s1 }
 0x2dc   :  { %221 = shalt.err (!%p218_p10)
}
 0x2dd   :  { %s231_s9 = smov [#allocation6]  }
 0x2de   :  { %159 = dma.smem_to_hbm %s231_s9, 16, %s288_s3, [#allocation5]  }
 0x2df   :  { %224 = dma.done.wait [#allocation5], 16  }
 0x2e0   :  { %225 = vsyncadd [#allocation5], 4294967280 }
 0x2e1   :  { %163 = sfence }
 0x2e2   :  { %164 = vsyncpa [#allocation4], 1 }
 0x2e3   :  { %165 = vsyncpa [#allocation5], 1 }

</bundles_post_ra>
